<compile_context>
chip_gen: v5e
topology: v5e:2x2
jax: 0.10.0
libtpu: 0.0.40
codegen_flags: <defaults>
</compile_context>

<pallas_src>
import math

import jax
import jax.numpy as jnp
from jax.experimental import pallas as pl
from jax.experimental.pallas import tpu as pltpu


def create_position_encoding(d_model, max_length, dtype=jnp.float32):
    """Sin/cos positional-encoding table, matching the PyTorch module."""
    position = jnp.arange(max_length, dtype=jnp.float32)[:, None]          # (L, 1)
    div_term = jnp.exp(
        -jnp.arange(0, d_model, 2, dtype=jnp.float32) * (math.log(10000.0) / d_model)
    )                                                                       # (ceil(d/2),)
    tmp = position * div_term                                               # (L, ceil(d/2))
    pe = jnp.zeros((max_length, d_model), dtype=jnp.float32)
    pe = pe.at[:, 0::2].set(jnp.sin(tmp))                                   # even cols
    pe = pe.at[:, 1::2].set(jnp.cos(tmp)[:, : d_model // 2])                # odd cols (odd-d safe)
    return pe.astype(dtype)


def _pos_enc_kernel(x_ref, pe_ref, o_ref):
    # x_ref : (block_seq, d_model)  input tile, batch dim squeezed
    # pe_ref: (block_seq, d_model)  matching positional-encoding rows (same dtype as x)
    # o_ref : (block_seq, d_model)
    o_ref[...] = x_ref[...] + pe_ref[...]


def _round_up(n, m):
    return ((n + m - 1) // m) * m


def _vmem_ceiling_bytes():
    """Safe VMEM scoped-limit ceiling for the current chip."""
    cap = 64 * 1024 * 1024  # conservative default (v7x physical VMEM per TC)
    try:
        info = pltpu.get_tpu_info()
        cap = int(getattr(info, "vmem_capacity_bytes", cap))
    except Exception:
        pass
    # Stay well under physical capacity; 48 MiB fits every generation.
    return min(48 * 1024 * 1024, int(cap * 0.75))


def positional_encoding(x, pe_table, *, block_seq=None):
    """x: (batch, seq, d_model); pe_table: (max_length, d_model)."""
    batch, seq, d_model = x.shape
    max_length, pe_d = pe_table.shape
    assert pe_d == d_model, "PE table feature dim must match d_model"
    assert seq <= max_length, "sequence longer than the PE table"
    # Perf note: d_model should be a multiple of 128 for lane-dense (unmasked)
    # stores; a full-width block is still legal otherwise, just slower.

    itemsize = jnp.dtype(x.dtype).itemsize
    # Sublane packing of the second-to-last dim: 8 rows for 4-byte dtypes,
    # 16 for bf16/fp16, 32 for int8/fp8.
    sublane_mult = 8 * max(1, 4 // itemsize)

    # Pre-cast PE once in the wrapper; kernel does a same-dtype add.
    pe = pe_table[:seq].astype(x.dtype)                    # (seq, d_model)

    if block_seq is None:
        # Size the seq tile by bytes (~2 MiB per x tile) so per-grid-step
        # fixed overhead (~0.35 us) is amortized on all generations.
        target_tile_bytes = 2 * 1024 * 1024
        rows = target_tile_bytes // max(1, d_model * itemsize)
        rows = max(sublane_mult, (rows // sublane_mult) * sublane_mult)
        block_seq = min(rows, _round_up(seq, sublane_mult))
    else:
        block_seq = max(sublane_mult, _round_up(block_seq, sublane_mult))

    # Ragged edge handled by Pallas (masked edge block) — no pad / post-slice.
    n_seq_blocks = pl.cdiv(seq, block_seq)

    # Explicit VMEM budget: double-buffered x / pe / out tiles + headroom.
    tile_bytes = block_seq * d_model * itemsize
    vmem_limit = int(2 * 3 * tile_bytes * 1.5) + (1 << 20)
    vmem_limit = max(4 * 1024 * 1024, min(vmem_limit, _vmem_ceiling_bytes()))

    # Grid: (seq_blocks, batch) with batch innermost so the PE block index is
    # constant along the inner loop and its repeat DMA is elided.
    out = pl.pallas_call(
        _pos_enc_kernel,
        out_shape=jax.ShapeDtypeStruct((batch, seq, d_model), x.dtype),
        grid_spec=pltpu.PrefetchScalarGridSpec(
            num_scalar_prefetch=0,
            grid=(n_seq_blocks, batch),
            in_specs=[
                # batch dim squeezed away -> kernel sees (block_seq, d_model)
                pl.BlockSpec((pl.Squeezed(), block_seq, d_model),
                             lambda s, b: (b, s, 0)),
                # PE shared across batch: block index depends only on s
                pl.BlockSpec((block_seq, d_model), lambda s, b: (s, 0)),
            ],
            out_specs=pl.BlockSpec((pl.Squeezed(), block_seq, d_model),
                                   lambda s, b: (b, s, 0)),
        ),
        compiler_params=pltpu.CompilerParams(
            dimension_semantics=("parallel", "parallel"),
            vmem_limit_bytes=vmem_limit,
        ),
    )(x, pe)

    return out


def positional_encoding_ref(x, pe_table):
    return x + pe_table[None, : x.shape[1], :].astype(x.dtype)


if __name__ == "__main__":
    # Small shapes consistent with the module (d_model scaled down from 512,
    # max_length scaled down from 1000). seq=20 deliberately not a multiple of
    # the seq tile, exercising the pad-free ragged-edge path.
    batch, seq, d_model, max_length = 2, 20, 128, 64

    key = jax.random.PRNGKey(0)
    x = jax.random.normal(key, (batch, seq, d_model), dtype=jnp.float32)
    pe_table = create_position_encoding(d_model, max_length)

    out = positional_encoding(x, pe_table)
    out = jax.block_until_ready(out)

    ref = positional_encoding_ref(x, pe_table)
    assert out.shape == (batch, seq, d_model)
    assert jnp.allclose(out, ref, atol=1e-6, rtol=1e-6), "mismatch vs reference"

    print("KERNEL_OK")
</pallas_src>

<mosaic_0001>
module attributes {stable_mosaic.version = 11 : i64} {
  func.func @_pos_enc_kernel(%arg0: i32, %arg1: i32, %arg2: memref<1x24x128xf32, #tpu.memory_space<vmem>>, %arg3: memref<24x128xf32, #tpu.memory_space<vmem>>, %arg4: memref<1x24x128xf32, #tpu.memory_space<vmem>>) attributes {dimension_semantics = [#tpu.dimension_semantics<parallel>, #tpu.dimension_semantics<parallel>], iteration_bounds = array<i64: 1, 2>, scalar_prefetch = 0 : i64, scratch_operands = 0 : i64, tpu.core_type = #tpu.core_type<tc>, window_params = [{transform_indices = @transform_0, window_bounds = array<i64: 1, 24, 128>}, {transform_indices = @transform_1, window_bounds = array<i64: 24, 128>}, {transform_indices = @transform_2, window_bounds = array<i64: 1, 24, 128>}]} {
    %c0 = arith.constant 0 : index
    %c0_0 = arith.constant 0 : index
    %c0_1 = arith.constant 0 : index
    %0 = vector.load %arg2[%c0, %c0_0, %c0_1] : memref<1x24x128xf32, #tpu.memory_space<vmem>>, vector<1x24x128xf32>
    %1 = vector.shape_cast %0 : vector<1x24x128xf32> to vector<24x128xf32>
    %c0_2 = arith.constant 0 : index
    %c0_3 = arith.constant 0 : index
    %2 = vector.load %arg3[%c0_2, %c0_3] : memref<24x128xf32, #tpu.memory_space<vmem>>, vector<24x128xf32>
    %3 = arith.addf %1, %2 : vector<24x128xf32>
    %c0_4 = arith.constant 0 : index
    %c0_5 = arith.constant 0 : index
    %c0_6 = arith.constant 0 : index
    %4 = vector.load %arg4[%c0_4, %c0_5, %c0_6] : memref<1x24x128xf32, #tpu.memory_space<vmem>>, vector<1x24x128xf32>
    %5 = vector.shape_cast %4 : vector<1x24x128xf32> to vector<24x128xf32>
    %6 = vector.shape_cast %3 : vector<24x128xf32> to vector<1x24x128xf32>
    tpu.vector_store %arg4[%c0_4, %c0_5, %c0_6], %6 {strides = array<i32>} : memref<1x24x128xf32, #tpu.memory_space<vmem>>, vector<1x24x128xf32>,
    return
  }
  func.func @transform_0(%arg0: i32, %arg1: i32) -> (i32, i32, i32) {
    %c0_i32 = arith.constant 0 : i32
    %c0_i32_0 = arith.constant 0 : i32
    return %arg1, %arg0, %c0_i32 : i32, i32, i32
  }
  func.func @transform_1(%arg0: i32, %arg1: i32) -> (i32, i32) {
    %c0_i32 = arith.constant 0 : i32
    %c0_i32_0 = arith.constant 0 : i32
    return %arg0, %c0_i32 : i32, i32
  }
  func.func @transform_2(%arg0: i32, %arg1: i32) -> (i32, i32, i32) {
    %c0_i32 = arith.constant 0 : i32
    %c0_i32_0 = arith.constant 0 : i32
    return %arg1, %arg0, %c0_i32 : i32, i32, i32
  }
}

</mosaic_0001>

<bundles_post_ra>
// kernel: tpu_custom_call.1
= control target key start
LH: loop header
LB: loop body
LE: loop exit
PB: predicated region body
PF: predicated region fallthrough
CT: control target
= control target key end

     0   :  { %s393_s9 = smov 0   ;;  %s395_s10 = smov 0   ;;  %s428_s0 = inlined_call_operand.vmem [shape: f32[2,20,128], index: 0, kind: input, shape index: {}]   ;;  %s429_s1 = inlined_call_operand.vmem [shape: f32[20,128], index: 1, kind: input, shape index: {}]   ;;  %s430_s2 = inlined_call_operand.vmem [shape: f32[2,20,128], index: 2, kind: output, shape index: {}]  }
   0x1   :  { %s397_s11 = smov 0  }
   0x2 LB: > { %s21_s12 = sadd.s32 1, %s372_s10  ;;  %p324_p0 = scmp.ge.s32.totalorder %s376_s11, 1  ;;  %s376_s11 = sphi %s397_s11, %s12_s11   ;;  %s372_s10 = sphi %s395_s10, %s432_s10   ;;  %s368_s9 = sphi %s393_s9, %s431_s9  }
   0x3   : > { %p22_p1 = scmp.ge.s32.totalorder %s21_s12, 2  ;;  %p144_p2 = scmp.lt.s32.totalorder %s376_s11, 3 }
   0x5   : > { %s434_s12 = smov (%p22_p1, %s21_s12), 0  ;;  %p145_p3 = pnand %p324_p0, %p144_p2 }
   0x6   : > { %p180_p4 = scmp.lt.s32.totalorder (!%p145_p3), %s368_s9, 1 }
   0x7   : > { %148 = sbr.rel (%p145_p3) target bundleno = 22 (0x16), region = 28 }
   0xc   : > { %s436_s9 = smov (!%p180_p4, %s368_s9), 1  ;;  %v208_v0 = vld [vmem:[%s429_s1] sm:$0xff]  ;;  %v209_v1 = vld [vmem:[%s429_s1 + $0x8] sm:$0xff]  ;;  %v210_v2 = vld [vmem:[%s429_s1 + $0x10] sm:$0xff] }
   0xd   : > { %s329_s13 = smul.u32 24, %s436_s9 }
   0xf   : > { %s187_s22 = scalar_lea.vmem %s428_s0, %s329_s13  ;;  %s203_s25 = scalar_lea.vmem %s430_s2, %s329_s13 }
  0x10   : > { %v205_v3 = vld [vmem:[%s187_s22] sm:$0xff]  ;;  %v206_v4 = vld [vmem:[%s187_s22 + $0x8] sm:$0xff]  ;;  %v207_v5 = vld [vmem:[%s187_s22 + $0x10] sm:$0xff] }
  0x11   : > { %v211_v6 = vadd.f32 %v208_v0, %v205_v3  ;;  %v212_v7 = vadd.f32 %v209_v1, %v206_v4  ;;  %v213_v8 = vadd.f32 %v210_v2, %v207_v5 }
  0x13   : > { %214 = vst [vmem:[%s203_s25] sm:$0xff] %v211_v6 }
  0x14   : > { %215 = vst [vmem:[%s203_s25 + $0x8] sm:$0xff] %v212_v7 }
  0x15   : > { %216 = vst [vmem:[%s203_s25 + $0x10] sm:$0xff] %v213_v8 }
  0x16 PF: > { %s12_s11 = sadd.s32 1, %s376_s11   ;;  %s431_s9 = smov %s372_s10 }
  0x17   : > { %p9_p5 = scmp.ge.s32.totalorder %s12_s11, 4   ;;  %s432_s10 = smov %s434_s12 }
  0x19   :  { %11 = sbr.rel (!%p9_p5) target bundleno = 2 (0x2), region = 61 }

</bundles_post_ra>
